<compile_context>
chip_gen: v6e
topology: v6e:2x2x1
jax: 0.10.0
libtpu: 0.0.40
codegen_flags: <defaults>
</compile_context>

<pallas_src>
import functools

import jax
import jax.numpy as jnp
from jax.experimental import pallas as pl
from jax.experimental.pallas import tpu as pltpu


def _downsample_kernel(x_ref, halo_ref, w_ref, b_ref, o_ref, *, th, w_out, c_in, c_out):
    """One grid step: one batch element x one tile of TH output rows.

    x_ref    : (1, 4, TH, Wh, C_in)   parity planes, plane rows [t*TH, t*TH+TH)
    halo_ref : (1, 4, 1,  Wh, C_in)   parity planes, plane row  t*TH+TH (halo)
    w_ref    : (3, 3, C_in, C_out)    conv weight, tap-major
    b_ref    : (1, C_out)             bias
    o_ref    : (1, TH, Wout, C_out)   output tile (NHWC inside the kernel)
    """
    n = th * w_out
    acc = jnp.zeros((n, c_out), jnp.float32)
    for kh in range(3):
        dh, qh = divmod(kh, 2)          # kh = 2*dh + qh
        for kw in range(3):
            dw, qw = divmod(kw, 2)      # kw = 2*dw + qw
            p = 2 * qh + qw             # parity-plane index
            if dh == 0:
                patch = x_ref[0, p, :, dw:dw + w_out, :]
            elif th > 1:
                patch = jnp.concatenate(
                    [x_ref[0, p, 1:th, dw:dw + w_out, :],
                     halo_ref[0, p, :, dw:dw + w_out, :]],
                    axis=0)
            else:
                patch = halo_ref[0, p, :, dw:dw + w_out, :]
            lhs = patch.reshape(n, c_in)
            acc = acc + jnp.dot(lhs, w_ref[kh, kw],
                                preferred_element_type=jnp.float32)
    acc = acc + b_ref[...].astype(jnp.float32)
    o_ref[...] = acc.reshape(1, th, w_out, c_out).astype(o_ref.dtype)


def downsample(x, weight, bias, *, h_tile=None):
    """Conv2d(dim, dim, 3, stride=2, padding=1) forward.  x: (B, C, H, W) NCHW.

    weight: (C_out, C_in, 3, 3) (PyTorch layout); bias: (C_out,).
    """
    B, C, H, W = x.shape
    c_out, c_in, kh_, kw_ = weight.shape
    assert (c_in, kh_, kw_) == (C, 3, 3)

    h_out = (H - 1) // 2 + 1
    w_out = (W - 1) // 2 + 1
    hh, wh = h_out + 1, w_out + 1          # parity-plane extents
    hp, wp = 2 * hh, 2 * wh                # even padded-image extents

    # Zero-pad (top/left = 1, bottom/right up to hp/wp) and space-to-depth:
    # x_s2d[b, 2*qh+qw, i, j, c] = x_pad[b, c, 2*i+qh, 2*j+qw]
    x_p = jnp.pad(x, ((0, 0), (0, 0), (1, hp - H - 1), (1, wp - W - 1)))
    x_r = x_p.reshape(B, C, hh, 2, wh, 2)
    x_s2d = jnp.transpose(x_r, (0, 3, 5, 2, 4, 1)).reshape(B, 4, hh, wh, C)

    # Row-tile size: keep the (1, 4, TH, Wh, C) input block around ~2 MiB so the
    # double-buffered in+out blocks stay far below v7x's 64 MiB VMEM.
    row_bytes = 4 * wh * C * x.dtype.itemsize
    if h_tile is None:
        h_tile = max(1, min(h_out, (2 * 1024 * 1024) // max(row_bytes, 1)))
    th = int(h_tile)
    n_t = -(-h_out // th)                  # cdiv
    hh_pad = n_t * th + 1
    if hh_pad > hh:
        x_s2d = jnp.pad(x_s2d, ((0, 0), (0, 0), (0, hh_pad - hh), (0, 0), (0, 0)))

    w_t = jnp.transpose(weight, (2, 3, 1, 0))       # (3, 3, C_in, C_out)
    b_t = bias.reshape(1, c_out)

    kernel = functools.partial(_downsample_kernel, th=th, w_out=w_out,
                               c_in=C, c_out=c_out)
    out = pl.pallas_call(
        kernel,
        out_shape=jax.ShapeDtypeStruct((B, n_t * th, w_out, c_out), x.dtype),
        grid=(B, n_t),
        in_specs=[
            pl.BlockSpec((1, 4, th, wh, C), lambda b, t: (b, 0, t, 0, 0)),
            pl.BlockSpec((1, 4, 1, wh, C), lambda b, t: (b, 0, (t + 1) * th, 0, 0)),
            pl.BlockSpec((3, 3, C, c_out), lambda b, t: (0, 0, 0, 0)),
            pl.BlockSpec((1, c_out), lambda b, t: (0, 0)),
        ],
        out_specs=pl.BlockSpec((1, th, w_out, c_out), lambda b, t: (b, t, 0, 0)),
        compiler_params=pltpu.CompilerParams(
            dimension_semantics=("parallel", "parallel"),
            vmem_limit_bytes=64 * 1024 * 1024,
        ),
    )(x_s2d, x_s2d, w_t, b_t)

    out = out[:, :h_out]                          # drop padded output rows
    return jnp.transpose(out, (0, 3, 1, 2))       # back to NCHW


def _reference(x, weight, bias):
    """Pure-JAX reference mirroring torch.nn.Conv2d(dim, dim, 3, 2, 1)."""
    out = jax.lax.conv_general_dilated(
        x, weight, window_strides=(2, 2), padding=((1, 1), (1, 1)),
        dimension_numbers=("NCHW", "OIHW", "NCHW"))
    return out + bias.reshape(1, -1, 1, 1)


if __name__ == "__main__":
    key = jax.random.PRNGKey(0)
    kx1, kx2, kw, kb = jax.random.split(key, 4)

    B, C = 2, 4
    bound = 1.0 / (C * 3 * 3) ** 0.5              # torch Conv2d default init range
    weight = jax.random.uniform(kw, (C, C, 3, 3), minval=-bound, maxval=bound,
                                dtype=jnp.float32)
    bias = jax.random.uniform(kb, (C,), minval=-bound, maxval=bound,
                              dtype=jnp.float32)

    ok = True

    # Even spatial size (16x16): single row tile per batch element.
    x1 = jax.random.normal(kx1, (B, C, 16, 16), dtype=jnp.float32)
    o1 = jax.block_until_ready(downsample(x1, weight, bias))
    ok &= bool(jnp.allclose(o1, _reference(x1, weight, bias), atol=1e-5, rtol=1e-5))

    # Odd spatial size (15x15) + small row tile: exercises halo + padded partial tiles.
    x2 = jax.random.normal(kx2, (B, C, 15, 15), dtype=jnp.float32)
    o2 = jax.block_until_ready(downsample(x2, weight, bias, h_tile=3))
    ok &= bool(jnp.allclose(o2, _reference(x2, weight, bias), atol=1e-5, rtol=1e-5))

    print("KERNEL_OK" if ok else "KERNEL_MISMATCH")
</pallas_src>

<mosaic_0001>
module attributes {stable_mosaic.version = 11 : i64} {
  func.func @_downsample_kernel(%arg0: i32, %arg1: i32, %arg2: memref<1x4x8x9x4xf32, #tpu.memory_space<vmem>>, %arg3: memref<1x4x1x9x4xf32, #tpu.memory_space<vmem>>, %arg4: memref<3x3x4x4xf32, #tpu.memory_space<vmem>>, %arg5: memref<1x4xf32, #tpu.memory_space<vmem>>, %arg6: memref<1x8x8x4xf32, #tpu.memory_space<vmem>>) attributes {dimension_semantics = [#tpu.dimension_semantics<parallel>, #tpu.dimension_semantics<parallel>], iteration_bounds = array<i64: 2, 1>, scalar_prefetch = 0 : i64, scratch_operands = 0 : i64, tpu.core_type = #tpu.core_type<tc>, window_params = [{transform_indices = @transform_0, window_bounds = array<i64: 1, 4, 8, 9, 4>}, {transform_indices = @transform_1, window_bounds = array<i64: 1, 4, 1, 9, 4>}, {pipeline_mode = #tpu.pipeline_mode<synchronous>, transform_indices = @transform_2, window_bounds = array<i64: 3, 3, 4, 4>}, {pipeline_mode = #tpu.pipeline_mode<synchronous>, transform_indices = @transform_3, window_bounds = array<i64: 1, 4>}, {transform_indices = @transform_4, window_bounds = array<i64: 1, 8, 8, 4>}]} {
    %cst = arith.constant 0.000000e+00 : f32
    %0 = vector.broadcast %cst : f32 to vector<64x4xf32>
    %c0 = arith.constant 0 : index
    %c0_0 = arith.constant 0 : index
    %c0_1 = arith.constant 0 : index
    %c0_2 = arith.constant 0 : index
    %c0_3 = arith.constant 0 : index
    %1 = vector.load %arg2[%c0, %c0_0, %c0_1, %c0_2, %c0_3] : memref<1x4x8x9x4xf32, #tpu.memory_space<vmem>>, vector<1x1x8x8x4xf32>
    %2 = vector.shape_cast %1 : vector<1x1x8x8x4xf32> to vector<8x8x4xf32>
    %3 = vector.shape_cast %2 : vector<8x8x4xf32> to vector<64x4xf32>
    %c0_4 = arith.constant 0 : index
    %c0_5 = arith.constant 0 : index
    %c0_6 = arith.constant 0 : index
    %c0_7 = arith.constant 0 : index
    %4 = vector.load %arg4[%c0_4, %c0_5, %c0_6, %c0_7] : memref<3x3x4x4xf32, #tpu.memory_space<vmem>>, vector<1x1x4x4xf32>
    %5 = vector.shape_cast %4 : vector<1x1x4x4xf32> to vector<4x4xf32>
    %cst_8 = arith.constant dense<0.000000e+00> : vector<64x4xf32>
    %6 = tpu.matmul %3, %5, %cst_8 {dimension_numbers = #tpu.dot_dimension_numbers<[1], [0], [0], [1], [0, 0, 1, 1], [], []>} : vector<64x4xf32>, vector<4x4xf32>, vector<64x4xf32> -> vector<64x4xf32>
    %7 = arith.addf %0, %6 : vector<64x4xf32>
    %c0_9 = arith.constant 0 : index
    %c1 = arith.constant 1 : index
    %c0_10 = arith.constant 0 : index
    %c0_11 = arith.constant 0 : index
    %c0_12 = arith.constant 0 : index
    %8 = vector.load %arg2[%c0_9, %c1, %c0_10, %c0_11, %c0_12] : memref<1x4x8x9x4xf32, #tpu.memory_space<vmem>>, vector<1x1x8x8x4xf32>
    %9 = vector.shape_cast %8 : vector<1x1x8x8x4xf32> to vector<8x8x4xf32>
    %10 = vector.shape_cast %9 : vector<8x8x4xf32> to vector<64x4xf32>
    %c0_13 = arith.constant 0 : index
    %c1_14 = arith.constant 1 : index
    %c0_15 = arith.constant 0 : index
    %c0_16 = arith.constant 0 : index
    %11 = vector.load %arg4[%c0_13, %c1_14, %c0_15, %c0_16] : memref<3x3x4x4xf32, #tpu.memory_space<vmem>>, vector<1x1x4x4xf32>
    %12 = vector.shape_cast %11 : vector<1x1x4x4xf32> to vector<4x4xf32>
    %cst_17 = arith.constant dense<0.000000e+00> : vector<64x4xf32>
    %13 = tpu.matmul %10, %12, %cst_17 {dimension_numbers = #tpu.dot_dimension_numbers<[1], [0], [0], [1], [0, 0, 1, 1], [], []>} : vector<64x4xf32>, vector<4x4xf32>, vector<64x4xf32> -> vector<64x4xf32>
    %14 = arith.addf %7, %13 : vector<64x4xf32>
    %c0_18 = arith.constant 0 : index
    %c0_19 = arith.constant 0 : index
    %c0_20 = arith.constant 0 : index
    %c1_21 = arith.constant 1 : index
    %c0_22 = arith.constant 0 : index
    %15 = vector.load %arg2[%c0_18, %c0_19, %c0_20, %c1_21, %c0_22] : memref<1x4x8x9x4xf32, #tpu.memory_space<vmem>>, vector<1x1x8x8x4xf32>
    %16 = vector.shape_cast %15 : vector<1x1x8x8x4xf32> to vector<8x8x4xf32>
    %17 = vector.shape_cast %16 : vector<8x8x4xf32> to vector<64x4xf32>
    %c0_23 = arith.constant 0 : index
    %c2 = arith.constant 2 : index
    %c0_24 = arith.constant 0 : index
    %c0_25 = arith.constant 0 : index
    %18 = vector.load %arg4[%c0_23, %c2, %c0_24, %c0_25] : memref<3x3x4x4xf32, #tpu.memory_space<vmem>>, vector<1x1x4x4xf32>
    %19 = vector.shape_cast %18 : vector<1x1x4x4xf32> to vector<4x4xf32>
    %cst_26 = arith.constant dense<0.000000e+00> : vector<64x4xf32>
    %20 = tpu.matmul %17, %19, %cst_26 {dimension_numbers = #tpu.dot_dimension_numbers<[1], [0], [0], [1], [0, 0, 1, 1], [], []>} : vector<64x4xf32>, vector<4x4xf32>, vector<64x4xf32> -> vector<64x4xf32>
    %21 = arith.addf %14, %20 : vector<64x4xf32>
    %c0_27 = arith.constant 0 : index
    %c2_28 = arith.constant 2 : index
    %c0_29 = arith.constant 0 : index
    %c0_30 = arith.constant 0 : index
    %c0_31 = arith.constant 0 : index
    %22 = vector.load %arg2[%c0_27, %c2_28, %c0_29, %c0_30, %c0_31] : memref<1x4x8x9x4xf32, #tpu.memory_space<vmem>>, vector<1x1x8x8x4xf32>
    %23 = vector.shape_cast %22 : vector<1x1x8x8x4xf32> to vector<8x8x4xf32>
    %24 = vector.shape_cast %23 : vector<8x8x4xf32> to vector<64x4xf32>
    %c1_32 = arith.constant 1 : index
    %c0_33 = arith.constant 0 : index
    %c0_34 = arith.constant 0 : index
    %c0_35 = arith.constant 0 : index
    %25 = vector.load %arg4[%c1_32, %c0_33, %c0_34, %c0_35] : memref<3x3x4x4xf32, #tpu.memory_space<vmem>>, vector<1x1x4x4xf32>
    %26 = vector.shape_cast %25 : vector<1x1x4x4xf32> to vector<4x4xf32>
    %cst_36 = arith.constant dense<0.000000e+00> : vector<64x4xf32>
    %27 = tpu.matmul %24, %26, %cst_36 {dimension_numbers = #tpu.dot_dimension_numbers<[1], [0], [0], [1], [0, 0, 1, 1], [], []>} : vector<64x4xf32>, vector<4x4xf32>, vector<64x4xf32> -> vector<64x4xf32>
    %28 = arith.addf %21, %27 : vector<64x4xf32>
    %c0_37 = arith.constant 0 : index
    %c3 = arith.constant 3 : index
    %c0_38 = arith.constant 0 : index
    %c0_39 = arith.constant 0 : index
    %c0_40 = arith.constant 0 : index
    %29 = vector.load %arg2[%c0_37, %c3, %c0_38, %c0_39, %c0_40] : memref<1x4x8x9x4xf32, #tpu.memory_space<vmem>>, vector<1x1x8x8x4xf32>
    %30 = vector.shape_cast %29 : vector<1x1x8x8x4xf32> to vector<8x8x4xf32>
    %31 = vector.shape_cast %30 : vector<8x8x4xf32> to vector<64x4xf32>
    %c1_41 = arith.constant 1 : index
    %c1_42 = arith.constant 1 : index
    %c0_43 = arith.constant 0 : index
    %c0_44 = arith.constant 0 : index
    %32 = vector.load %arg4[%c1_41, %c1_42, %c0_43, %c0_44] : memref<3x3x4x4xf32, #tpu.memory_space<vmem>>, vector<1x1x4x4xf32>
    %33 = vector.shape_cast %32 : vector<1x1x4x4xf32> to vector<4x4xf32>
    %cst_45 = arith.constant dense<0.000000e+00> : vector<64x4xf32>
    %34 = tpu.matmul %31, %33, %cst_45 {dimension_numbers = #tpu.dot_dimension_numbers<[1], [0], [0], [1], [0, 0, 1, 1], [], []>} : vector<64x4xf32>, vector<4x4xf32>, vector<64x4xf32> -> vector<64x4xf32>
    %35 = arith.addf %28, %34 : vector<64x4xf32>
    %c0_46 = arith.constant 0 : index
    %c2_47 = arith.constant 2 : index
    %c0_48 = arith.constant 0 : index
    %c1_49 = arith.constant 1 : index
    %c0_50 = arith.constant 0 : index
    %36 = vector.load %arg2[%c0_46, %c2_47, %c0_48, %c1_49, %c0_50] : memref<1x4x8x9x4xf32, #tpu.memory_space<vmem>>, vector<1x1x8x8x4xf32>
    %37 = vector.shape_cast %36 : vector<1x1x8x8x4xf32> to vector<8x8x4xf32>
    %38 = vector.shape_cast %37 : vector<8x8x4xf32> to vector<64x4xf32>
    %c1_51 = arith.constant 1 : index
    %c2_52 = arith.constant 2 : index
    %c0_53 = arith.constant 0 : index
    %c0_54 = arith.constant 0 : index
    %39 = vector.load %arg4[%c1_51, %c2_52, %c0_53, %c0_54] : memref<3x3x4x4xf32, #tpu.memory_space<vmem>>, vector<1x1x4x4xf32>
    %40 = vector.shape_cast %39 : vector<1x1x4x4xf32> to vector<4x4xf32>
    %cst_55 = arith.constant dense<0.000000e+00> : vector<64x4xf32>
    %41 = tpu.matmul %38, %40, %cst_55 {dimension_numbers = #tpu.dot_dimension_numbers<[1], [0], [0], [1], [0, 0, 1, 1], [], []>} : vector<64x4xf32>, vector<4x4xf32>, vector<64x4xf32> -> vector<64x4xf32>
    %42 = arith.addf %35, %41 : vector<64x4xf32>
    %c0_56 = arith.constant 0 : index
    %c0_57 = arith.constant 0 : index
    %c1_58 = arith.constant 1 : index
    %c0_59 = arith.constant 0 : index
    %c0_60 = arith.constant 0 : index
    %43 = vector.load %arg2[%c0_56, %c0_57, %c1_58, %c0_59, %c0_60] : memref<1x4x8x9x4xf32, #tpu.memory_space<vmem>>, vector<1x1x7x8x4xf32>
    %44 = vector.shape_cast %43 : vector<1x1x7x8x4xf32> to vector<7x8x4xf32>
    %c0_61 = arith.constant 0 : index
    %c0_62 = arith.constant 0 : index
    %c0_63 = arith.constant 0 : index
    %c0_64 = arith.constant 0 : index
    %c0_65 = arith.constant 0 : index
    %45 = vector.load %arg3[%c0_61, %c0_62, %c0_63, %c0_64, %c0_65] : memref<1x4x1x9x4xf32, #tpu.memory_space<vmem>>, vector<1x1x1x8x4xf32>
    %46 = vector.shape_cast %45 : vector<1x1x1x8x4xf32> to vector<1x8x4xf32>
    %47 = tpu.concatenate %44, %46 in 0 : vector<7x8x4xf32>, vector<1x8x4xf32> -> vector<8x8x4xf32>
    %48 = vector.shape_cast %47 : vector<8x8x4xf32> to vector<64x4xf32>
    %c2_66 = arith.constant 2 : index
    %c0_67 = arith.constant 0 : index
    %c0_68 = arith.constant 0 : index
    %c0_69 = arith.constant 0 : index
    %49 = vector.load %arg4[%c2_66, %c0_67, %c0_68, %c0_69] : memref<3x3x4x4xf32, #tpu.memory_space<vmem>>, vector<1x1x4x4xf32>
    %50 = vector.shape_cast %49 : vector<1x1x4x4xf32> to vector<4x4xf32>
    %cst_70 = arith.constant dense<0.000000e+00> : vector<64x4xf32>
    %51 = tpu.matmul %48, %50, %cst_70 {dimension_numbers = #tpu.dot_dimension_numbers<[1], [0], [0], [1], [0, 0, 1, 1], [], []>} : vector<64x4xf32>, vector<4x4xf32>, vector<64x4xf32> -> vector<64x4xf32>
    %52 = arith.addf %42, %51 : vector<64x4xf32>
    %c0_71 = arith.constant 0 : index
    %c1_72 = arith.constant 1 : index
    %c1_73 = arith.constant 1 : index
    %c0_74 = arith.constant 0 : index
    %c0_75 = arith.constant 0 : index
    %53 = vector.load %arg2[%c0_71, %c1_72, %c1_73, %c0_74, %c0_75] : memref<1x4x8x9x4xf32, #tpu.memory_space<vmem>>, vector<1x1x7x8x4xf32>
    %54 = vector.shape_cast %53 : vector<1x1x7x8x4xf32> to vector<7x8x4xf32>
    %c0_76 = arith.constant 0 : index
    %c1_77 = arith.constant 1 : index
    %c0_78 = arith.constant 0 : index
    %c0_79 = arith.constant 0 : index
    %c0_80 = arith.constant 0 : index
    %55 = vector.load %arg3[%c0_76, %c1_77, %c0_78, %c0_79, %c0_80] : memref<1x4x1x9x4xf32, #tpu.memory_space<vmem>>, vector<1x1x1x8x4xf32>
    %56 = vector.shape_cast %55 : vector<1x1x1x8x4xf32> to vector<1x8x4xf32>
    %57 = tpu.concatenate %54, %56 in 0 : vector<7x8x4xf32>, vector<1x8x4xf32> -> vector<8x8x4xf32>
    %58 = vector.shape_cast %57 : vector<8x8x4xf32> to vector<64x4xf32>
    %c2_81 = arith.constant 2 : index
    %c1_82 = arith.constant 1 : index
    %c0_83 = arith.constant 0 : index
    %c0_84 = arith.constant 0 : index
    %59 = vector.load %arg4[%c2_81, %c1_82, %c0_83, %c0_84] : memref<3x3x4x4xf32, #tpu.memory_space<vmem>>, vector<1x1x4x4xf32>
    %60 = vector.shape_cast %59 : vector<1x1x4x4xf32> to vector<4x4xf32>
    %cst_85 = arith.constant dense<0.000000e+00> : vector<64x4xf32>
    %61 = tpu.matmul %58, %60, %cst_85 {dimension_numbers = #tpu.dot_dimension_numbers<[1], [0], [0], [1], [0, 0, 1, 1], [], []>} : vector<64x4xf32>, vector<4x4xf32>, vector<64x4xf32> -> vector<64x4xf32>
    %62 = arith.addf %52, %61 : vector<64x4xf32>
    %c0_86 = arith.constant 0 : index
    %c0_87 = arith.constant 0 : index
    %c1_88 = arith.constant 1 : index
    %c1_89 = arith.constant 1 : index
    %c0_90 = arith.constant 0 : index
    %63 = vector.load %arg2[%c0_86, %c0_87, %c1_88, %c1_89, %c0_90] : memref<1x4x8x9x4xf32, #tpu.memory_space<vmem>>, vector<1x1x7x8x4xf32>
    %64 = vector.shape_cast %63 : vector<1x1x7x8x4xf32> to vector<7x8x4xf32>
    %c0_91 = arith.constant 0 : index
    %c0_92 = arith.constant 0 : index
    %c0_93 = arith.constant 0 : index
    %c1_94 = arith.constant 1 : index
    %c0_95 = arith.constant 0 : index
    %65 = vector.load %arg3[%c0_91, %c0_92, %c0_93, %c1_94, %c0_95] : memref<1x4x1x9x4xf32, #tpu.memory_space<vmem>>, vector<1x1x1x8x4xf32>
    %66 = vector.shape_cast %65 : vector<1x1x1x8x4xf32> to vector<1x8x4xf32>
    %67 = tpu.concatenate %64, %66 in 0 : vector<7x8x4xf32>, vector<1x8x4xf32> -> vector<8x8x4xf32>
    %68 = vector.shape_cast %67 : vector<8x8x4xf32> to vector<64x4xf32>
    %c2_96 = arith.constant 2 : index
    %c2_97 = arith.constant 2 : index
    %c0_98 = arith.constant 0 : index
    %c0_99 = arith.constant 0 : index
    %69 = vector.load %arg4[%c2_96, %c2_97, %c0_98, %c0_99] : memref<3x3x4x4xf32, #tpu.memory_space<vmem>>, vector<1x1x4x4xf32>
    %70 = vector.shape_cast %69 : vector<1x1x4x4xf32> to vector<4x4xf32>
    %cst_100 = arith.constant dense<0.000000e+00> : vector<64x4xf32>
    %71 = tpu.matmul %68, %70, %cst_100 {dimension_numbers = #tpu.dot_dimension_numbers<[1], [0], [0], [1], [0, 0, 1, 1], [], []>} : vector<64x4xf32>, vector<4x4xf32>, vector<64x4xf32> -> vector<64x4xf32>
    %72 = arith.addf %62, %71 : vector<64x4xf32>
    %c0_101 = arith.constant 0 : index
    %c0_102 = arith.constant 0 : index
    %73 = vector.load %arg5[%c0_101, %c0_102] : memref<1x4xf32, #tpu.memory_space<vmem>>, vector<1x4xf32>
    %74 = vector.broadcast %73 : vector<1x4xf32> to vector<64x4xf32>
    %75 = arith.addf %72, %74 : vector<64x4xf32>
    %76 = vector.shape_cast %75 : vector<64x4xf32> to vector<1x8x8x4xf32>
    %c0_103 = arith.constant 0 : index
    %c0_104 = arith.constant 0 : index
    %c0_105 = arith.constant 0 : index
    %c0_106 = arith.constant 0 : index
    %77 = vector.load %arg6[%c0_103, %c0_104, %c0_105, %c0_106] : memref<1x8x8x4xf32, #tpu.memory_space<vmem>>, vector<1x8x8x4xf32>
    tpu.vector_store %arg6[%c0_103, %c0_104, %c0_105, %c0_106], %76 {strides = array<i32>} : memref<1x8x8x4xf32, #tpu.memory_space<vmem>>, vector<1x8x8x4xf32>,
    return
  }
  func.func @transform_0(%arg0: i32, %arg1: i32) -> (i32, i32, i32, i32, i32) {
    %c0_i32 = arith.constant 0 : i32
    %c0_i32_0 = arith.constant 0 : i32
    %c0_i32_1 = arith.constant 0 : i32
    %c0_i32_2 = arith.constant 0 : i32
    return %arg0, %c0_i32, %arg1, %c0_i32_0, %c0_i32_1 : i32, i32, i32, i32, i32
  }
  func.func @transform_1(%arg0: i32, %arg1: i32) -> (i32, i32, i32, i32, i32) {
    %c1_i32 = arith.constant 1 : i32
    %0 = arith.addi %arg1, %c1_i32 : i32
    %c8_i32 = arith.constant 8 : i32
    %1 = arith.muli %0, %c8_i32 : i32
    %c0_i32 = arith.constant 0 : i32
    %c0_i32_0 = arith.constant 0 : i32
    %c0_i32_1 = arith.constant 0 : i32
    %c0_i32_2 = arith.constant 0 : i32
    return %arg0, %c0_i32, %1, %c0_i32_0, %c0_i32_1 : i32, i32, i32, i32, i32
  }
  func.func @transform_2(%arg0: i32, %arg1: i32) -> (i32, i32, i32, i32) {
    %c0_i32 = arith.constant 0 : i32
    %c0_i32_0 = arith.constant 0 : i32
    %c0_i32_1 = arith.constant 0 : i32
    %c0_i32_2 = arith.constant 0 : i32
    %c0_i32_3 = arith.constant 0 : i32
    return %c0_i32, %c0_i32_0, %c0_i32_1, %c0_i32_2 : i32, i32, i32, i32
  }
  func.func @transform_3(%arg0: i32, %arg1: i32) -> (i32, i32) {
    %c0_i32 = arith.constant 0 : i32
    %c0_i32_0 = arith.constant 0 : i32
    %c0_i32_1 = arith.constant 0 : i32
    return %c0_i32, %c0_i32_0 : i32, i32
  }
  func.func @transform_4(%arg0: i32, %arg1: i32) -> (i32, i32, i32, i32) {
    %c0_i32 = arith.constant 0 : i32
    %c0_i32_0 = arith.constant 0 : i32
    %c0_i32_1 = arith.constant 0 : i32
    return %arg0, %arg1, %c0_i32, %c0_i32_0 : i32, i32, i32, i32
  }
}

</mosaic_0001>

<bundles_post_ra>
// kernel: tpu_custom_call.1
= control target key start
LH: loop header
LB: loop body
LE: loop exit
PB: predicated region body
PF: predicated region fallthrough
CT: control target
= control target key end

     0   :  { %s2771_s15 = smov 0   ;;  %s2773_s16 = smov 0   ;;  %s3285_s0 = inlined_call_operand.vmem [shape: f32[2,4,9,9,4], index: 0, kind: input, shape index: {}]   ;;  %s3286_s1 = inlined_call_operand.vmem [shape: f32[2,4,9,9,4], index: 1, kind: input, shape index: {}]   ;;  %s3287_s2 = inlined_call_operand.vmem [shape: f32[3,3,4,4], index: 2, kind: input, shape index: {}]   ;;  %s3288_s3 = inlined_call_operand.vmem [shape: f32[1,4], index: 3, kind: input, shape index: {}]   ;;  %s3289_s4 = inlined_call_operand.vmem [shape: f32[2,8,8,4], index: 4, kind: output, shape index: {}]  }
   0x1   :  { %s2775_s17 = smov 0   ;;  %s2777_s18 = smov 0  }
   0x2   :  { %s2779_s19 = smov 0  }
   0x3 LB: > { %s26_s20 = sadd.s32 1, %s2736_s18  ;;  %p42_p1 = scmp.ne.s32.totalorder %s2728_s16, %s2724_s15  ;;  %s2740_s19 = sphi %s2779_s19, %s14_s19   ;;  %s2736_s18 = sphi %s2777_s18, %s3294_s18   ;;  %s2732_s17 = sphi %s2775_s17, %s3293_s17   ;;  %s2728_s16 = sphi %s2773_s16, %s3292_s16   ;;  %s2724_s15 = sphi %s2771_s15, %s3291_s15  }
   0x4   : > { %p28_p0 = scmp.ge.s32.totalorder %s26_s20, 2  ;;  %p43_p2 = scmp.eq.s32.totalorder %s2740_s19, 0 }
   0x5   : > { %s35_s23 = sadd.s32 1, %s2728_s16  ;;  %p2231_p5 = scmp.ge.s32.totalorder %s2740_s19, 2 }
   0x6   : > { %s3296_s20 = smov (%p28_p0, %s26_s20), 0  ;;  %p2802_p3 = por %p43_p2, %p42_p1 }
   0x7   : > { %s30_s22 = ssub.s32 %s2736_s18, %s3296_s20  ;;  %176 = sbr.rel (%p2231_p5) target bundleno = 59 (0x3b), region = 24 }
   0x8   : > { %p33_p4 = scmp.eq.s32.totalorder %s30_s22, 0 }
   0xa   : > { %s2810_s24 = scalar_select %p33_p4, %s2728_s16, %s35_s23  }
   0xc   : > { %179 = sbr.rel (!%p2802_p3) target bundleno = 50 (0x32), region = 28  ;;  %s181_s25 = sand.u32 (%p2802_p3), 1, %s2728_s16  }
   0xd   : > { %s2613_s26 = smul.u32 (%p2802_p3), 576, %s2736_s18  ;;  %s2232_s27 = sshll.u32 (%p2802_p3), %s181_s25, 9 }
   0xe   : > { %s2822_s5 = scalar_lea.vmem (%p2802_p3), [#allocation2], %s2232_s27   ;;  %s2824_s6 = smov (%p2802_p3), 0  }
   0xf   : > { %s2820_s30 = scalar_lea.vmem (%p2802_p3), %s3285_s0, %s2613_s26  }
  0x11 LB: >> { %v394_v0 = vld [vmem:[%s2820_s30] sm:$0xff]  ;;  %v396_v1 = vld [vmem:[%s2820_s30 + $0x8] sm:$0xff]  ;;  %v398_v2 = vld [vmem:[%s2820_s30 + $0x10] sm:$0xff]  ;;  %s388_s6 = sadd.s32 1, %s2744_s6   ;;  %s2744_s6 = sphi %s2824_s6, %s388_s6  }
  0x12   : >> { %395 = vst [vmem:[%s2822_s5] sm:$0xff] %v394_v0  ;;  %397 = vst [vmem:[%s2822_s5 + $0x8] sm:$0xff] %v396_v1  ;;  %v400_v3 = vld [vmem:[%s2820_s30 + $0x18] sm:$0xff]  ;;  %v402_v4 = vld [vmem:[%s2820_s30 + $0x20] sm:$0xff]  ;;  %p387_p6 = scmp.ge.s32.totalorder %s388_s6, 1 }
  0x13   : >> { %399 = vst [vmem:[%s2822_s5 + $0x10] sm:$0xff] %v398_v2  ;;  %v404_v5 = vld [vmem:[%s2820_s30 + $0x28] sm:$0xff]  ;;  %401 = vst [vmem:[%s2822_s5 + $0x18] sm:$0xff] %v400_v3  ;;  %v406_v6 = vld [vmem:[%s2820_s30 + $0x30] sm:$0xff] }
  0x14   : >> { %403 = vst [vmem:[%s2822_s5 + $0x20] sm:$0xff] %v402_v4  ;;  %405 = vst [vmem:[%s2822_s5 + $0x28] sm:$0xff] %v404_v5  ;;  %v408_v7 = vld [vmem:[%s2820_s30 + $0x38] sm:$0xff]  ;;  %v410_v8 = vld [vmem:[%s2820_s30 + $0x40] sm:$0xff] }
  0x15   : >> { %407 = vst [vmem:[%s2822_s5 + $0x30] sm:$0xff] %v406_v6  ;;  %409 = vst [vmem:[%s2822_s5 + $0x38] sm:$0xff] %v408_v7  ;;  %v412_v9 = vld [vmem:[%s2820_s30 + $0x48] sm:$0xff]  ;;  %v414_v10 = vld [vmem:[%s2820_s30 + $0x50] sm:$0xff] }
  0x16   : >> { %411 = vst [vmem:[%s2822_s5 + $0x40] sm:$0xff] %v410_v8  ;;  %v416_v11 = vld [vmem:[%s2820_s30 + $0x58] sm:$0xff]  ;;  %413 = vst [vmem:[%s2822_s5 + $0x48] sm:$0xff] %v412_v9  ;;  %v418_v12 = vld [vmem:[%s2820_s30 + $0x60] sm:$0xff] }
  0x17   : >> { %415 = vst [vmem:[%s2822_s5 + $0x50] sm:$0xff] %v414_v10  ;;  %417 = vst [vmem:[%s2822_s5 + $0x58] sm:$0xff] %v416_v11  ;;  %v420_v13 = vld [vmem:[%s2820_s30 + $0x68] sm:$0xff]  ;;  %v422_v14 = vld [vmem:[%s2820_s30 + $0x70] sm:$0xff] }
  0x18   : >> { %419 = vst [vmem:[%s2822_s5 + $0x60] sm:$0xff] %v418_v12  ;;  %421 = vst [vmem:[%s2822_s5 + $0x68] sm:$0xff] %v420_v13  ;;  %v424_v15 = vld [vmem:[%s2820_s30 + $0x78] sm:$0xff]  ;;  %v426_v16 = vld [vmem:[%s2820_s30 + $0x90] sm:$0xff] }
  0x19   : >> { %423 = vst [vmem:[%s2822_s5 + $0x70] sm:$0xff] %v422_v14  ;;  %v428_v17 = vld [vmem:[%s2820_s30 + $0x98] sm:$0xff]  ;;  %425 = vst [vmem:[%s2822_s5 + $0x78] sm:$0xff] %v424_v15  ;;  %v430_v18 = vld [vmem:[%s2820_s30 + $0xa0] sm:$0xff] }
  0x1a   : >> { %427 = vst [vmem:[%s2822_s5 + $0x80] sm:$0xff] %v426_v16  ;;  %429 = vst [vmem:[%s2822_s5 + $0x88] sm:$0xff] %v428_v17  ;;  %v432_v19 = vld [vmem:[%s2820_s30 + $0xa8] sm:$0xff]  ;;  %v434_v20 = vld [vmem:[%s2820_s30 + $0xb0] sm:$0xff] }
  0x1b   : >> { %431 = vst [vmem:[%s2822_s5 + $0x90] sm:$0xff] %v430_v18  ;;  %433 = vst [vmem:[%s2822_s5 + $0x98] sm:$0xff] %v432_v19  ;;  %v436_v21 = vld [vmem:[%s2820_s30 + $0xb8] sm:$0xff]  ;;  %v438_v22 = vld [vmem:[%s2820_s30 + $0xc0] sm:$0xff] }
  0x1c   : >> { %435 = vst [vmem:[%s2822_s5 + $0xa0] sm:$0xff] %v434_v20  ;;  %v440_v23 = vld [vmem:[%s2820_s30 + $0xc8] sm:$0xff]  ;;  %437 = vst [vmem:[%s2822_s5 + $0xa8] sm:$0xff] %v436_v21  ;;  %v442_v24 = vld [vmem:[%s2820_s30 + $0xd0] sm:$0xff] }
  0x1d   : >> { %439 = vst [vmem:[%s2822_s5 + $0xb0] sm:$0xff] %v438_v22  ;;  %441 = vst [vmem:[%s2822_s5 + $0xb8] sm:$0xff] %v440_v23  ;;  %v444_v25 = vld [vmem:[%s2820_s30 + $0xd8] sm:$0xff]  ;;  %v446_v26 = vld [vmem:[%s2820_s30 + $0xe0] sm:$0xff] }
  0x1e   : >> { %443 = vst [vmem:[%s2822_s5 + $0xc0] sm:$0xff] %v442_v24  ;;  %445 = vst [vmem:[%s2822_s5 + $0xc8] sm:$0xff] %v444_v25  ;;  %v448_v27 = vld [vmem:[%s2820_s30 + $0xe8] sm:$0xff]  ;;  %v450_v28 = vld [vmem:[%s2820_s30 + $0xf0] sm:$0xff] }
  0x1f   : >> { %447 = vst [vmem:[%s2822_s5 + $0xd0] sm:$0xff] %v446_v26  ;;  %v452_v29 = vld [vmem:[%s2820_s30 + $0xf8] sm:$0xff]  ;;  %449 = vst [vmem:[%s2822_s5 + $0xd8] sm:$0xff] %v448_v27  ;;  %v454_v30 = vld [vmem:[%s2820_s30 + $0x100] sm:$0xff] }
  0x20   : >> { %451 = vst [vmem:[%s2822_s5 + $0xe0] sm:$0xff] %v450_v28  ;;  %453 = vst [vmem:[%s2822_s5 + $0xe8] sm:$0xff] %v452_v29  ;;  %v456_v31 = vld [vmem:[%s2820_s30 + $0x108] sm:$0xff]  ;;  %v458_v32 = vld [vmem:[%s2820_s30 + $0x120] sm:$0xff] }
  0x21   : >> { %455 = vst [vmem:[%s2822_s5 + $0xf0] sm:$0xff] %v454_v30  ;;  %457 = vst [vmem:[%s2822_s5 + $0xf8] sm:$0xff] %v456_v31  ;;  %v460_v33 = vld [vmem:[%s2820_s30 + $0x128] sm:$0xff]  ;;  %v462_v34 = vld [vmem:[%s2820_s30 + $0x130] sm:$0xff] }
  0x22   : >> { %459 = vst [vmem:[%s2822_s5 + $0x100] sm:$0xff] %v458_v32  ;;  %v464_v35 = vld [vmem:[%s2820_s30 + $0x138] sm:$0xff]  ;;  %461 = vst [vmem:[%s2822_s5 + $0x108] sm:$0xff] %v460_v33  ;;  %v466_v36 = vld [vmem:[%s2820_s30 + $0x140] sm:$0xff] }
  0x23   : >> { %463 = vst [vmem:[%s2822_s5 + $0x110] sm:$0xff] %v462_v34  ;;  %465 = vst [vmem:[%s2822_s5 + $0x118] sm:$0xff] %v464_v35  ;;  %v468_v37 = vld [vmem:[%s2820_s30 + $0x148] sm:$0xff]  ;;  %v470_v38 = vld [vmem:[%s2820_s30 + $0x150] sm:$0xff] }
  0x24   : >> { %467 = vst [vmem:[%s2822_s5 + $0x120] sm:$0xff] %v466_v36  ;;  %469 = vst [vmem:[%s2822_s5 + $0x128] sm:$0xff] %v468_v37  ;;  %v472_v39 = vld [vmem:[%s2820_s30 + $0x158] sm:$0xff]  ;;  %v474_v40 = vld [vmem:[%s2820_s30 + $0x160] sm:$0xff] }
  0x25   : >> { %471 = vst [vmem:[%s2822_s5 + $0x130] sm:$0xff] %v470_v38  ;;  %v476_v41 = vld [vmem:[%s2820_s30 + $0x168] sm:$0xff]  ;;  %473 = vst [vmem:[%s2822_s5 + $0x138] sm:$0xff] %v472_v39  ;;  %v478_v42 = vld [vmem:[%s2820_s30 + $0x170] sm:$0xff] }
  0x26   : >> { %475 = vst [vmem:[%s2822_s5 + $0x140] sm:$0xff] %v474_v40  ;;  %477 = vst [vmem:[%s2822_s5 + $0x148] sm:$0xff] %v476_v41  ;;  %v480_v43 = vld [vmem:[%s2820_s30 + $0x178] sm:$0xff]  ;;  %v482_v44 = vld [vmem:[%s2820_s30 + $0x180] sm:$0xff] }
  0x27   : >> { %479 = vst [vmem:[%s2822_s5 + $0x150] sm:$0xff] %v478_v42  ;;  %481 = vst [vmem:[%s2822_s5 + $0x158] sm:$0xff] %v480_v43  ;;  %v484_v45 = vld [vmem:[%s2820_s30 + $0x188] sm:$0xff]  ;;  %v486_v46 = vld [vmem:[%s2820_s30 + $0x190] sm:$0xff] }
  0x28   : >> { %483 = vst [vmem:[%s2822_s5 + $0x160] sm:$0xff] %v482_v44  ;;  %v488_v47 = vld [vmem:[%s2820_s30 + $0x198] sm:$0xff]  ;;  %485 = vst [vmem:[%s2822_s5 + $0x168] sm:$0xff] %v484_v45  ;;  %v490_v48 = vld [vmem:[%s2820_s30 + $0x1b0] sm:$0xff] }
  0x29   : >> { %487 = vst [vmem:[%s2822_s5 + $0x170] sm:$0xff] %v486_v46  ;;  %489 = vst [vmem:[%s2822_s5 + $0x178] sm:$0xff] %v488_v47  ;;  %v492_v49 = vld [vmem:[%s2820_s30 + $0x1b8] sm:$0xff]  ;;  %v494_v50 = vld [vmem:[%s2820_s30 + $0x1c0] sm:$0xff] }
  0x2a   : >> { %491 = vst [vmem:[%s2822_s5 + $0x180] sm:$0xff] %v490_v48  ;;  %493 = vst [vmem:[%s2822_s5 + $0x188] sm:$0xff] %v492_v49  ;;  %v496_v51 = vld [vmem:[%s2820_s30 + $0x1c8] sm:$0xff]  ;;  %v498_v52 = vld [vmem:[%s2820_s30 + $0x1d0] sm:$0xff] }
  0x2b   : >> { %495 = vst [vmem:[%s2822_s5 + $0x190] sm:$0xff] %v494_v50  ;;  %v500_v53 = vld [vmem:[%s2820_s30 + $0x1d8] sm:$0xff]  ;;  %497 = vst [vmem:[%s2822_s5 + $0x198] sm:$0xff] %v496_v51  ;;  %v502_v54 = vld [vmem:[%s2820_s30 + $0x1e0] sm:$0xff] }
  0x2c   : >> { %499 = vst [vmem:[%s2822_s5 + $0x1a0] sm:$0xff] %v498_v52  ;;  %501 = vst [vmem:[%s2822_s5 + $0x1a8] sm:$0xff] %v500_v53  ;;  %v504_v55 = vld [vmem:[%s2820_s30 + $0x1e8] sm:$0xff]  ;;  %v506_v56 = vld [vmem:[%s2820_s30 + $0x1f0] sm:$0xff] }
  0x2d   : >> { %503 = vst [vmem:[%s2822_s5 + $0x1b0] sm:$0xff] %v502_v54  ;;  %505 = vst [vmem:[%s2822_s5 + $0x1b8] sm:$0xff] %v504_v55  ;;  %v508_v57 = vld [vmem:[%s2820_s30 + $0x1f8] sm:$0xff]  ;;  %v510_v58 = vld [vmem:[%s2820_s30 + $0x200] sm:$0xff]  ;;  %390 = sbr.rel (!%p387_p6) target bundleno = 17 (0x11), region = 191 }
  0x2e   : >> { %507 = vst [vmem:[%s2822_s5 + $0x1c0] sm:$0xff] %v506_v56  ;;  %v512_v59 = vld [vmem:[%s2820_s30 + $0x208] sm:$0xff]  ;;  %509 = vst [vmem:[%s2822_s5 + $0x1c8] sm:$0xff] %v508_v57  ;;  %v514_v60 = vld [vmem:[%s2820_s30 + $0x210] sm:$0xff] }
  0x2f   : >> { %511 = vst [vmem:[%s2822_s5 + $0x1d0] sm:$0xff] %v510_v58  ;;  %513 = vst [vmem:[%s2822_s5 + $0x1d8] sm:$0xff] %v512_v59  ;;  %v516_v61 = vld [vmem:[%s2820_s30 + $0x218] sm:$0xff]  ;;  %v518_v62 = vld [vmem:[%s2820_s30 + $0x220] sm:$0xff] }
  0x30   : >> { %515 = vst [vmem:[%s2822_s5 + $0x1e0] sm:$0xff] %v514_v60  ;;  %517 = vst [vmem:[%s2822_s5 + $0x1e8] sm:$0xff] %v516_v61  ;;  %v520_v63 = vld [vmem:[%s2820_s30 + $0x228] sm:$0xff] }
  0x31   : >> { %519 = vst [vmem:[%s2822_s5 + $0x1f0] sm:$0xff] %v518_v62  ;;  %521 = vst [vmem:[%s2822_s5 + $0x1f8] sm:$0xff] %v520_v63 }
  0x32 PF: > { %565 = sbr.rel (!%p2802_p3) target bundleno = 59 (0x3b), region = 80  ;;  %s567_s7 = sand.u32 (%p2802_p3), 1, %s2728_s16  }
  0x33   : > { %s2243_s8 = smul.u32 (%p2802_p3), 576, %s2736_s18  ;;  %s2242_s9 = sshll.u32 (%p2802_p3), %s567_s7, 6 }
  0x34   : > { %s569_s13 = scalar_lea.vmem (%p2802_p3), [#allocation3], %s2242_s9 }
  0x35   : > { %s2135_s12 = scalar_lea.vmem (%p2802_p3), %s3286_s1, %s2243_s8 }
  0x36   : > { %v2244_v0 = vld [vmem:[%s2135_s12 + $0x80] sm:$0xff] (%p2802_p3)  ;;  %v2245_v1 = vld [vmem:[%s2135_s12 + $0x88] sm:$0xff] (%p2802_p3)  ;;  %v2246_v2 = vld [vmem:[%s2135_s12 + $0x110] sm:$0xff] (%p2802_p3) }
  0x37   : > { %620 = vst [vmem:[%s569_s13] sm:$0xff] %v2244_v0  ;;  %622 = vst [vmem:[%s569_s13 + $0x8] sm:$0xff] %v2245_v1  ;;  %v2247_v3 = vld [vmem:[%s2135_s12 + $0x118] sm:$0xff]  ;;  %v2248_v4 = vld [vmem:[%s2135_s12 + $0x1a0] sm:$0xff] }
  0x38   : > { %624 = vst [vmem:[%s569_s13 + $0x10] sm:$0xff] %v2246_v2  ;;  %v2249_v5 = vld [vmem:[%s2135_s12 + $0x1a8] sm:$0xff]  ;;  %626 = vst [vmem:[%s569_s13 + $0x18] sm:$0xff] %v2247_v3  ;;  %v2250_v6 = vld [vmem:[%s2135_s12 + $0x230] sm:$0xff] }
  0x39   : > { %628 = vst [vmem:[%s569_s13 + $0x20] sm:$0xff] %v2248_v4  ;;  %630 = vst [vmem:[%s569_s13 + $0x28] sm:$0xff] %v2249_v5  ;;  %v2251_v7 = vld [vmem:[%s2135_s12 + $0x238] sm:$0xff] }
  0x3a   : > { %632 = vst [vmem:[%s569_s13 + $0x30] sm:$0xff] %v2250_v6  ;;  %634 = vst [vmem:[%s569_s13 + $0x38] sm:$0xff] %v2251_v7 }
  0x3b PF: > { %p2252_p7 = scmp.ge.s32.totalorder %s2740_s19, 1  ;;  %p639_p8 = scmp.lt.s32.totalorder %s2740_s19, 3 }
  0x3d   : > { %p640_p9 = pnand %p2252_p7, %p639_p8 }
  0x3e   : > { %s646_s22 = sand.u32 (!%p640_p9), 1, %s2724_s15   ;;  %p695_p10 = scmp.lt.s32.totalorder (!%p640_p9), %s2732_s17, 1 }
  0x3f   : > { %643 = sbr.rel (%p640_p9) target bundleno = 343 (0x157), region = 118  ;;  %s2253_s23 = sshll.u32 (!%p640_p9), %s646_s22, 9 }
  0x40   : > { %s2985_s29 = scalar_lea.vmem (!%p640_p9), [#allocation2], %s2253_s23  ;;  %s2254_s23 = sshll.u32 (!%p640_p9), %s646_s22, 6 }
  0x41   : > { %s655_s15 = scalar_lea.vmem (!%p640_p9), [#allocation3], %s2254_s23 }
  0x44   : > { %v2265_v8 = vld [vmem:[%s3287_s2 + $0x4] sm:$0xf]  ;;  %vm749_vm0 = vcmask 1043456   ;;  %vm724_vm1 = vcmask 31744   ;;  %v712_v9 = vld [vmem:[%s3287_s2] sm:$0xf] }
  0x45   : > { %2611 = vmatprep.subr.msk.mxu1 %vm749_vm0, %v2265_v8  ;;  %2485 = vmatprep.subr.msk.mxu0 %vm749_vm0, %v2265_v8  ;;  %v2284_v10 = vld [vmem:[%s3287_s2 + $0x8] sm:$0xf]  ;;  %v2257_v11 = vld [vmem:[%s2985_s29 + $0x80] sm:$0xff]  ;;  %v2993_v13 = vld [vmem:[%s2985_s29 + $0x90] sm:$0xff]  ;;  %s3298_s17 = smov (!%p695_p10, %s2732_s17), 1 }
  0x46   : > { %2612 = vmatpush3.msk.msra.mxu1 %vm749_vm0, %v2265_v8  ;;  %2486 = vmatpush3.msk.msra.mxu0 %vm749_vm0, %v2265_v8  ;;  %v2989_v12 = vld [vmem:[%s2985_s29 + $0xc0] sm:$0xff]  ;;  %v3000_v14 = vld [vmem:[%s2985_s29 + $0xd0] sm:$0xff]  ;;  %v2302_v17 = vld [vmem:[%s3287_s2 + $0xc] sm:$0xf]  ;;  %s2403_s22 = sshll.u32 %s3298_s17, 6 }
  0x47   : > { %2499 = vmatprep.subr.msk.mxu1 %vm749_vm0, %v712_v9  ;;  %2513 = vmatprep.subr.msk.mxu0 %vm749_vm0, %v2284_v10  ;;  %v3003_v15 = vld [vmem:[%s2985_s29 + $0xa0] sm:$0xff]  ;;  %v2320_v18 = vld [vmem:[%s3287_s2 + $0x10] sm:$0xf]  ;;  %v2338_v27 = vld [vmem:[%s3287_s2 + $0x14] sm:$0xf] }
  0x48   : > { %2487 = vmatprep.mubr.msk.f32.mxu0 %vm724_vm1, %v2257_v11  ;;  %2493 = vmatprep.mubr.msk.f32.mxu1 %vm724_vm1, %v2989_v12  ;;  %v3006_v16 = vld [vmem:[%s2985_s29 + $0xe0] sm:$0xff]  ;;  %v3021_v19 = vld [vmem:[%s2985_s29 + $0xb0] sm:$0xff]  ;;  %v2355_v28 = vld [vmem:[%s3287_s2 + $0x18] sm:$0xf] }
  0x49   : > { %2488 = vmatmul.mubr.msk.f32.vlgmr.msra.gmra.mxu0 %vm724_vm1, %v2993_v13  ;;  %2494 = vmatmul.mubr.msk.f32.vlgmr.msra.gmra.mxu1 %vm724_vm1, %v3000_v14  ;;  %v3024_v20 = vld [vmem:[%s2985_s29 + $0xf0] sm:$0xff]  ;;  %v704_v21 = vld [vmem:[%s2985_s29] sm:$0xff]  ;;  %v2373_v45 = vld [vmem:[%s3287_s2 + $0x1c] sm:$0xf] }
  0x4a   : > { %2500 = vmatpush3.msk.msra.mxu1 %vm749_vm0, %v712_v9  ;;  %2514 = vmatpush3.msk.msra.mxu0 %vm749_vm0, %v2284_v10  ;;  %v990_v22 = vld [vmem:[%s2985_s29 + $0x1] sm:$0xff]  ;;  %v3041_v23 = vld [vmem:[%s2985_s29 + $0x10] sm:$0xff] }
  0x4b   : > { %2490 = vmatprep.mubr.msk.f32.mxu0 %vm724_vm1, %v3003_v15  ;;  %2496 = vmatprep.mubr.msk.f32.mxu1 %vm724_vm1, %v3006_v16  ;;  %v3044_v24 = vld [vmem:[%s2985_s29 + $0x11] sm:$0xff]  ;;  %v3047_v25 = vld [vmem:[%s2985_s29 + $0x20] sm:$0xff] }
  0x4c   : > { %2527 = vmatprep.subr.msk.mxu1 %vm749_vm0, %v2302_v17  ;;  %2541 = vmatprep.subr.msk.mxu0 %vm749_vm0, %v2320_v18  ;;  %v3050_v26 = vld [vmem:[%s2985_s29 + $0x21] sm:$0xff]  ;;  %v3065_v29 = vld [vmem:[%s2985_s29 + $0x30] sm:$0xff] }
  0x4d   : > { %2491 = vmatmul.mubr.msk.f32.gmra.mxu0 %vm724_vm1, %v3021_v19  ;;  %2497 = vmatmul.mubr.msk.f32.gmra.mxu1 %vm724_vm1, %v3024_v20  ;;  %v3068_v30 = vld [vmem:[%s2985_s29 + $0x31] sm:$0xff]  ;;  %v3075_v31 = vld [vmem:[%s2985_s29 + $0x40] sm:$0xff] }
  0x4e   : > { %2501 = vmatprep.mubr.msk.f32.mxu1 %vm724_vm1, %v704_v21  ;;  %2515 = vmatprep.mubr.msk.f32.mxu0 %vm724_vm1, %v990_v22  ;;  %v3078_v32 = vld [vmem:[%s2985_s29 + $0x41] sm:$0xff]  ;;  %v3091_v33 = vld [vmem:[%s2985_s29 + $0x50] sm:$0xff] }
  0x4f   : > { %v3094_v34 = vld [vmem:[%s2985_s29 + $0x51] sm:$0xff]  ;;  %v3097_v35 = vld [vmem:[%s2985_s29 + $0x60] sm:$0xff] }
  0x50   : > { %v3100_v36 = vld [vmem:[%s2985_s29 + $0x61] sm:$0xff]  ;;  %v3111_v37 = vld [vmem:[%s2985_s29 + $0x70] sm:$0xff] }
  0x51   : > { %2502 = vmatmul.mubr.msk.f32.vlgmr.msra.gmra.mxu1 %vm724_vm1, %v3041_v23  ;;  %2516 = vmatmul.mubr.msk.f32.vlgmr.msra.gmra.mxu0 %vm724_vm1, %v3044_v24  ;;  %v3114_v38 = vld [vmem:[%s2985_s29 + $0x71] sm:$0xff]  ;;  %v2294_v39 = vld [vmem:[%s2985_s29 + $0x100] sm:$0xff] }
  0x52   : > { %2528 = vmatpush3.msk.msra.mxu1 %vm749_vm0, %v2302_v17  ;;  %2542 = vmatpush3.msk.msra.mxu0 %vm749_vm0, %v2320_v18  ;;  %v2312_v40 = vld [vmem:[%s2985_s29 + $0x180] sm:$0xff]  ;;  %v2295_v41 = vld [vmem:[%s2985_s29 + $0x110] sm:$0xff] }
  0x53   : > { %2504 = vmatprep.mubr.msk.f32.mxu1 %vm724_vm1, %v3047_v25  ;;  %2518 = vmatprep.mubr.msk.f32.mxu0 %vm724_vm1, %v3050_v26  ;;  %v2313_v42 = vld [vmem:[%s2985_s29 + $0x190] sm:$0xff]  ;;  %v2296_v43 = vld [vmem:[%s2985_s29 + $0x120] sm:$0xff] }
  0x54   : > { %2555 = vmatprep.subr.msk.mxu1 %vm749_vm0, %v2338_v27  ;;  %2569 = vmatprep.subr.msk.mxu0 %vm749_vm0, %v2355_v28  ;;  %v2314_v44 = vld [vmem:[%s2985_s29 + $0x1a0] sm:$0xff]  ;;  %v2297_v47 = vld [vmem:[%s2985_s29 + $0x130] sm:$0xff] }
  0x55   : > { %2505 = vmatmul.mubr.msk.f32.gmra.mxu1 %vm724_vm1, %v3065_v29  ;;  %2519 = vmatmul.mubr.msk.f32.gmra.mxu0 %vm724_vm1, %v3068_v30  ;;  %v2390_v46 = vld [vmem:[%s3287_s2 + $0x20] sm:$0xf]  ;;  %v2315_v48 = vld [vmem:[%s2985_s29 + $0x1b0] sm:$0xff] }
  0x56   : > { %2507 = vmatprep.mubr.msk.f32.mxu1 %vm724_vm1, %v3075_v31  ;;  %2521 = vmatprep.mubr.msk.f32.mxu0 %vm724_vm1, %v3078_v32  ;;  %v2298_v49 = vld [vmem:[%s2985_s29 + $0x140] sm:$0xff]  ;;  %v2299_v51 = vld [vmem:[%s2985_s29 + $0x150] sm:$0xff] }
  0x57   : > { %v2316_v50 = vld [vmem:[%s2985_s29 + $0x1c0] sm:$0xff]  ;;  %v2317_v52 = vld [vmem:[%s2985_s29 + $0x1d0] sm:$0xff] }
  0x58   : > { %v2300_v53 = vld [vmem:[%s2985_s29 + $0x160] sm:$0xff]  ;;  %v2301_v55 = vld [vmem:[%s2985_s29 + $0x170] sm:$0xff] }
  0x59   : > { %2508 = vmatmul.mubr.msk.f32.gmra.mxu1 %vm724_vm1, %v3091_v33  ;;  %2522 = vmatmul.mubr.msk.f32.gmra.mxu0 %vm724_vm1, %v3094_v34  ;;  %v2318_v54 = vld [vmem:[%s2985_s29 + $0x1e0] sm:$0xff]  ;;  %v2319_v56 = vld [vmem:[%s2985_s29 + $0x1f0] sm:$0xff] }
  0x5a   : > { %2510 = vmatprep.mubr.msk.f32.mxu1 %vm724_vm1, %v3097_v35  ;;  %2524 = vmatprep.mubr.msk.f32.mxu0 %vm724_vm1, %v3100_v36  ;;  %v2330_v57 = vld [vmem:[%s2985_s29 + $0x101] sm:$0xff]  ;;  %v2331_v58 = vld [vmem:[%s2985_s29 + $0x111] sm:$0xff] }
  0x5b   : > { %v2332_v59 = vld [vmem:[%s2985_s29 + $0x121] sm:$0xff]  ;;  %v2333_v60 = vld [vmem:[%s2985_s29 + $0x131] sm:$0xff] }
  0x5c   : > { %v2334_v61 = vld [vmem:[%s2985_s29 + $0x141] sm:$0xff]  ;;  %v2335_v62 = vld [vmem:[%s2985_s29 + $0x151] sm:$0xff] }
  0x5d   : > { %2511 = vmatmul.mubr.msk.f32.gmra.mxu1 %vm724_vm1, %v3111_v37  ;;  %2525 = vmatmul.mubr.msk.f32.gmra.mxu0 %vm724_vm1, %v3114_v38  ;;  %v2336_v63 = vld [vmem:[%s2985_s29 + $0x161] sm:$0xff]  ;;  %v2337_v0 = vld [vmem:[%s2985_s29 + $0x171] sm:$0xff]  ;;  %s3251_s29 = scalar_lea.vmem %s3289_s4, %s2403_s22 }
  0x5e   : > { %2529 = vmatprep.mubr.msk.f32.mxu1 %vm724_vm1, %v2294_v39  ;;  %2543 = vmatprep.mubr.msk.f32.mxu0 %vm724_vm1, %v2312_v40  ;;  %v1600_v1 = vld [vmem:[%s655_s15] sm:$0xff]  ;;  %v2372_v2 = vld [vmem:[%s655_s15 + $0x10] sm:$0xff] }
  0x5f   : > { %v1902_v3 = vld [vmem:[%s655_s15 + $0x1] sm:$0xff] }
  0x61   : > { %2530 = vmatmul.mubr.msk.f32.vlgmr.msra.gmra.mxu1 %vm724_vm1, %v2295_v41  ;;  %2544 = vmatmul.mubr.msk.f32.vlgmr.msra.gmra.mxu0 %vm724_vm1, %v2313_v42 }
  0x62   : > { %2556 = vmatpush3.msk.msra.mxu1 %vm749_vm0, %v2338_v27  ;;  %2570 = vmatpush3.msk.msra.mxu0 %vm749_vm0, %v2355_v28 }
  0x63   : > { %2532 = vmatprep.mubr.msk.f32.mxu1 %vm724_vm1, %v2296_v43  ;;  %2546 = vmatprep.mubr.msk.f32.mxu0 %vm724_vm1, %v2314_v44 }
  0x64   : > { %2583 = vmatprep.subr.msk.mxu1 %vm749_vm0, %v2373_v45  ;;  %2597 = vmatprep.subr.msk.mxu0 %vm749_vm0, %v2390_v46 }
  0x65   : > { %2533 = vmatmul.mubr.msk.f32.gmra.mxu1 %vm724_vm1, %v2297_v47  ;;  %2547 = vmatmul.mubr.msk.f32.gmra.mxu0 %vm724_vm1, %v2315_v48 }
  0x66   : > { %2535 = vmatprep.mubr.msk.f32.mxu1 %vm724_vm1, %v2298_v49  ;;  %2549 = vmatprep.mubr.msk.f32.mxu0 %vm724_vm1, %v2316_v50 }
  0x69   : > { %2536 = vmatmul.mubr.msk.f32.gmra.mxu1 %vm724_vm1, %v2299_v51  ;;  %2550 = vmatmul.mubr.msk.f32.gmra.mxu0 %vm724_vm1, %v2317_v52 }
  0x6a   : > { %2538 = vmatprep.mubr.msk.f32.mxu1 %vm724_vm1, %v2300_v53  ;;  %2552 = vmatprep.mubr.msk.f32.mxu0 %vm724_vm1, %v2318_v54 }
  0x6d   : > { %2539 = vmatmul.mubr.msk.f32.gmra.mxu1 %vm724_vm1, %v2301_v55  ;;  %2553 = vmatmul.mubr.msk.f32.gmra.mxu0 %vm724_vm1, %v2319_v56 }
  0x6e   : > { %2557 = vmatprep.mubr.msk.f32.mxu1 %vm724_vm1, %v2330_v57  ;;  %2571 = vmatprep.mubr.msk.f32.mxu0 %vm724_vm1, %v3041_v23 }
  0x71   : > { %2558 = vmatmul.mubr.msk.f32.vlgmr.msra.gmra.mxu1 %vm724_vm1, %v2331_v58  ;;  %2572 = vmatmul.mubr.msk.f32.vlgmr.msra.gmra.mxu0 %vm724_vm1, %v3047_v25 }
  0x72   : > { %2584 = vmatpush3.msk.msra.mxu1 %vm749_vm0, %v2373_v45  ;;  %2598 = vmatpush3.msk.msra.mxu0 %vm749_vm0, %v2390_v46 }
  0x73   : > { %2560 = vmatprep.mubr.msk.f32.mxu1 %vm724_vm1, %v2332_v59  ;;  %2574 = vmatprep.mubr.msk.f32.mxu0 %vm724_vm1, %v3065_v29 }
  0x75   : > { %2561 = vmatmul.mubr.msk.f32.gmra.mxu1 %vm724_vm1, %v2333_v60  ;;  %2575 = vmatmul.mubr.msk.f32.gmra.mxu0 %vm724_vm1, %v3075_v31 }
  0x76   : > { %2563 = vmatprep.mubr.msk.f32.mxu1 %vm724_vm1, %v2334_v61  ;;  %2577 = vmatprep.mubr.msk.f32.mxu0 %vm724_vm1, %v3091_v33 }
  0x79   : > { %2564 = vmatmul.mubr.msk.f32.gmra.mxu1 %vm724_vm1, %v2335_v62  ;;  %2578 = vmatmul.mubr.msk.f32.gmra.mxu0 %vm724_vm1, %v3097_v35 }
  0x7a   : > { %2566 = vmatprep.mubr.msk.f32.mxu1 %vm724_vm1, %v2336_v63  ;;  %2580 = vmatprep.mubr.msk.f32.mxu0 %vm724_vm1, %v3111_v37 }
  0x7d   : > { %2567 = vmatmul.mubr.msk.f32.gmra.mxu1 %vm724_vm1, %v2337_v0  ;;  %2581 = vmatmul.mubr.msk.f32.gmra.mxu0 %vm724_vm1, %v1600_v1 }
  0x7e   : > { %2585 = vmatprep.mubr.msk.f32.mxu1 %vm724_vm1, %v2993_v13  ;;  %2599 = vmatprep.mubr.msk.f32.mxu0 %vm724_vm1, %v3044_v24 }
  0x81   : > { %2586 = vmatmul.mubr.msk.f32.vlgmr.msra.gmra.mxu1 %vm724_vm1, %v3003_v15  ;;  %2600 = vmatmul.mubr.msk.f32.vlgmr.msra.gmra.mxu0 %vm724_vm1, %v3050_v26 }
  0x82   : > { %2588 = vmatprep.mubr.msk.f32.mxu1 %vm724_vm1, %v3021_v19  ;;  %2602 = vmatprep.mubr.msk.f32.mxu0 %vm724_vm1, %v3068_v30 }
  0x85   : > { %2589 = vmatmul.mubr.msk.f32.gmra.mxu1 %vm724_vm1, %v2989_v12  ;;  %2603 = vmatmul.mubr.msk.f32.gmra.mxu0 %vm724_vm1, %v3078_v32 }
  0x86   : > { %2591 = vmatprep.mubr.msk.f32.mxu1 %vm724_vm1, %v3000_v14  ;;  %2605 = vmatprep.mubr.msk.f32.mxu0 %vm724_vm1, %v3094_v34 }
  0x89   : > { %2592 = vmatmul.mubr.msk.f32.gmra.mxu1 %vm724_vm1, %v3006_v16  ;;  %2606 = vmatmul.mubr.msk.f32.gmra.mxu0 %vm724_vm1, %v3100_v36 }
  0x8a   : > { %2594 = vmatprep.mubr.msk.f32.mxu1 %vm724_vm1, %v3024_v20  ;;  %2608 = vmatprep.mubr.msk.f32.mxu0 %vm724_vm1, %v3114_v38 }
  0x8d   : > { %2595 = vmatmul.mubr.msk.f32.gmra.mxu1 %vm724_vm1, %v2372_v2  ;;  %2609 = vmatmul.mubr.msk.f32.gmra.mxu0 %vm724_vm1, %v1902_v3 }
 0x109   : > { %v2489_v4 = vpop.f32.mrf.mxu0  ;;  %v2495_v5 = vpop.f32.mrf.mxu1 }
 0x10b   : > { %v819_v6 = vpop.f32.mrf.mxu0  ;;  %v839_v7 = vpop.f32.mrf.mxu1 }
 0x10d   : > { %v2492_v8 = vpop.f32.mrf.mxu0  ;;  %v2498_v9 = vpop.f32.mrf.mxu1 }
 0x10f   : > { %v829_v10 = vpop.f32.mrf.mxu0  ;;  %v3227_v11 = vpop.f32.mrf.mxu1 }
 0x111   : > { %v2503_v12 = vpop.f32.mrf.mxu1  ;;  %v2517_v13 = vpop.f32.mrf.mxu0 }
 0x112   : > { %v957_v44 = vadd.f32 %v2503_v12, %v2489_v4 }
 0x113   : > { %v951_v14 = vpop.f32.mrf.mxu1  ;;  %v1093_v15 = vpop.f32.mrf.mxu0 }
 0x114   : > { %v952_v47 = vadd.f32 %v951_v14, %v819_v6  ;;  %v1133_v50 = vadd.f32 %v2517_v13, %v957_v44 }
 0x115   : > { %v2506_v16 = vpop.f32.mrf.mxu1  ;;  %v2520_v17 = vpop.f32.mrf.mxu0 }
 0x116   : > { %v967_v51 = vadd.f32 %v2506_v16, %v2492_v8  ;;  %v1132_v54 = vadd.f32 %v1093_v15, %v952_v47 }
 0x117   : > { %v961_v18 = vpop.f32.mrf.mxu1  ;;  %v1103_v19 = vpop.f32.mrf.mxu0 }
 0x118   : > { %v962_v55 = vadd.f32 %v961_v18, %v829_v10  ;;  %v1135_v60 = vadd.f32 %v2520_v17, %v967_v51 }
 0x119   : > { %v2509_v20 = vpop.f32.mrf.mxu1  ;;  %v2523_v21 = vpop.f32.mrf.mxu0 }
 0x11a   : > { %v977_v57 = vadd.f32 %v2509_v20, %v2495_v5  ;;  %v1134_v1 = vadd.f32 %v1103_v19, %v962_v55 }
 0x11b   : > { %v971_v22 = vpop.f32.mrf.mxu1  ;;  %v1113_v23 = vpop.f32.mrf.mxu0 }
 0x11c   : > { %v972_v62 = vadd.f32 %v971_v22, %v839_v7  ;;  %v1137_v4 = vadd.f32 %v2523_v21, %v977_v57 }
 0x11d   : > { %v2512_v24 = vpop.f32.mrf.mxu1  ;;  %v2526_v25 = vpop.f32.mrf.mxu0 }
 0x11e   : > { %v987_v6 = vadd.f32 %v2512_v24, %v2498_v9  ;;  %v1136_v14 = vadd.f32 %v1113_v23, %v972_v62 }
 0x11f   : > { %v981_v26 = vpop.f32.mrf.mxu1  ;;  %v3229_v27 = vpop.f32.mrf.mxu0 }
 0x120   : > { %v982_v15 = vadd.f32 %v981_v26, %v3227_v11  ;;  %v1139_v20 = vadd.f32 %v2526_v25, %v987_v6  ;;  %v2400_v25 = vld [vmem:[%s3288_s3] ss:$0 sm:$0xff] }
 0x121   : > { %v2531_v28 = vpop.f32.mrf.mxu1  ;;  %v2545_v29 = vpop.f32.mrf.mxu0 }
 0x122   : > { %v1284_v56 = vadd.f32 %v2531_v28, %v1133_v50  ;;  %v1138_v23 = vadd.f32 %v3229_v27, %v982_v15 }
 0x123   : > { %v1244_v30 = vpop.f32.mrf.mxu1  ;;  %v1395_v31 = vpop.f32.mrf.mxu0 }
 0x124   : > { %v1283_v61 = vadd.f32 %v1244_v30, %v1132_v54  ;;  %v1435_v2 = vadd.f32 %v2545_v29, %v1284_v56 }
 0x125   : > { %v2534_v32 = vpop.f32.mrf.mxu1  ;;  %v2548_v33 = vpop.f32.mrf.mxu0 }
 0x126   : > { %v1286_v3 = vadd.f32 %v2534_v32, %v1135_v60  ;;  %v1434_v10 = vadd.f32 %v1395_v31, %v1283_v61 }
 0x127   : > { %v1254_v34 = vpop.f32.mrf.mxu1  ;;  %v1405_v35 = vpop.f32.mrf.mxu0 }
 0x128   : > { %v1285_v13 = vadd.f32 %v1254_v34, %v1134_v1  ;;  %v1437_v18 = vadd.f32 %v2548_v33, %v1286_v3 }
 0x129   : > { %v2537_v36 = vpop.f32.mrf.mxu1  ;;  %v2551_v37 = vpop.f32.mrf.mxu0 }
 0x12a   : > { %v1288_v16 = vadd.f32 %v2537_v36, %v1137_v4  ;;  %v1436_v24 = vadd.f32 %v1405_v35, %v1285_v13 }
 0x12b   : > { %v1264_v38 = vpop.f32.mrf.mxu1  ;;  %v1415_v39 = vpop.f32.mrf.mxu0 }
 0x12c   : > { %v1287_v21 = vadd.f32 %v1264_v38, %v1136_v14  ;;  %v1439_v30 = vadd.f32 %v2551_v37, %v1288_v16 }
 0x12d   : > { %v2540_v40 = vpop.f32.mrf.mxu1  ;;  %v3231_v41 = vpop.f32.mrf.mxu0 }
 0x12e   : > { %v1290_v11 = vadd.f32 %v2540_v40, %v1139_v20  ;;  %v1438_v36 = vadd.f32 %v1415_v39, %v1287_v21 }
 0x12f   : > { %v1274_v42 = vpop.f32.mrf.mxu1  ;;  %v3233_v43 = vpop.f32.mrf.mxu0 }
 0x130   : > { %v1289_v44 = vadd.f32 %v1274_v42, %v1138_v23  ;;  %v1441_v37 = vadd.f32 %v3231_v41, %v1290_v11 }
 0x131   : > { %v2559_v45 = vpop.f32.mrf.mxu1  ;;  %v2573_v46 = vpop.f32.mrf.mxu0 }
 0x132   : > { %v1585_v5 = vadd.f32 %v2559_v45, %v1435_v2 }
 0x133   : > { %v1545_v48 = vpop.f32.mrf.mxu1  ;;  %v1696_v49 = vpop.f32.mrf.mxu0 }
 0x134   : > { %v1584_v19 = vadd.f32 %v1545_v48, %v1434_v10  ;;  %v1736_v28 = vadd.f32 %v2573_v46, %v1585_v5 }
 0x135   : > { %v2562_v52 = vpop.f32.mrf.mxu1  ;;  %v2576_v53 = vpop.f32.mrf.mxu0 }
 0x136   : > { %v1587_v29 = vadd.f32 %v2562_v52, %v1437_v18  ;;  %v1735_v32 = vadd.f32 %v1696_v49, %v1584_v19  ;;  %v1440_v52 = vadd.f32 %v3233_v43, %v1289_v44 }
 0x137   : > { %v1555_v58 = vpop.f32.mrf.mxu1  ;;  %v1706_v59 = vpop.f32.mrf.mxu0 }
 0x138   : > { %v1586_v33 = vadd.f32 %v1555_v58, %v1436_v24  ;;  %v1738_v46 = vadd.f32 %v2576_v53, %v1587_v29 }
 0x139   : > { %v2565_v63 = vpop.f32.mrf.mxu1  ;;  %v2579_v0 = vpop.f32.mrf.mxu0 }
 0x13a   : > { %v1589_v45 = vadd.f32 %v2565_v63, %v1439_v30  ;;  %v1737_v48 = vadd.f32 %v1706_v59, %v1586_v33 }
 0x13b   : > { %v1565_v8 = vpop.f32.mrf.mxu1  ;;  %v1716_v12 = vpop.f32.mrf.mxu0 }
 0x13c   : > { %v1588_v40 = vadd.f32 %v1565_v8, %v1438_v36  ;;  %v1740_v53 = vadd.f32 %v2579_v0, %v1589_v45 }
 0x13d   : > { %v2568_v7 = vpop.f32.mrf.mxu1  ;;  %v2582_v17 = vpop.f32.mrf.mxu0 }
 0x13e   : > { %v1591_v41 = vadd.f32 %v2568_v7, %v1441_v37  ;;  %v1739_v60 = vadd.f32 %v1716_v12, %v1588_v40 }
 0x13f   : > { %v1575_v9 = vpop.f32.mrf.mxu1  ;;  %v1726_v22 = vpop.f32.mrf.mxu0 }
 0x140   : > { %v1590_v59 = vadd.f32 %v1575_v9, %v1440_v52  ;;  %v1742_v3 = vadd.f32 %v2582_v17, %v1591_v41 }
 0x141   : > { %v2587_v26 = vpop.f32.mrf.mxu1  ;;  %v2601_v31 = vpop.f32.mrf.mxu0 }
 0x142   : > { %v1888_v34 = vadd.f32 %v2587_v26, %v1736_v28  ;;  %v1741_v13 = vadd.f32 %v1726_v22, %v1590_v59 }
 0x143   : > { %v1848_v35 = vpop.f32.mrf.mxu1  ;;  %v1998_v38 = vpop.f32.mrf.mxu0 }
 0x144   : > { %v2038_v47 = vadd.f32 %v2601_v31, %v1888_v34  ;;  %v1887_v27 = vadd.f32 %v1848_v35, %v1735_v32 }
 0x145   : > { %v2590_v39 = vpop.f32.mrf.mxu1  ;;  %v2604_v42 = vpop.f32.mrf.mxu0 }
 0x146   : > { %v2053_v49 = vadd.f32 %v2400_v25, %v2038_v47  ;;  %v2037_v50 = vadd.f32 %v1998_v38, %v1887_v27  ;;  %v1890_v51 = vadd.f32 %v2590_v39, %v1738_v46 }
 0x147   : > { %v1858_v54 = vpop.f32.mrf.mxu1  ;;  %v2008_v55 = vpop.f32.mrf.mxu0 }
 0x148   : > { %2061 = vst.msk [vmem:[%s3251_s29 + $0x8] sm:$0xff] %vm724_vm1, %v2053_v49  ;;  %v2052_v56 = vadd.f32 %v2400_v25, %v2037_v50  ;;  %v2040_v57 = vadd.f32 %v2604_v42, %v1890_v51  ;;  %v1889_v58 = vadd.f32 %v1858_v54, %v1737_v48 }
 0x149   : > { %v2593_v61 = vpop.f32.mrf.mxu1  ;;  %v2607_v62 = vpop.f32.mrf.mxu0 }
 0x14a   : > { %2060 = vst.msk [vmem:[%s3251_s29] sm:$0xff] %vm724_vm1, %v2052_v56  ;;  %v2055_v63 = vadd.f32 %v2400_v25, %v2040_v57  ;;  %v2039_v1 = vadd.f32 %v2008_v55, %v1889_v58  ;;  %v1892_v43 = vadd.f32 %v2593_v61, %v1740_v53 }
 0x14b   : > { %v1868_v0 = vpop.f32.mrf.mxu1  ;;  %v2018_v2 = vpop.f32.mrf.mxu0 }
 0x14c   : > { %2063 = vst.msk [vmem:[%s3251_s29 + $0x18] sm:$0xff] %vm724_vm1, %v2055_v63  ;;  %v2054_v4 = vadd.f32 %v2400_v25, %v2039_v1  ;;  %v2042_v6 = vadd.f32 %v2607_v62, %v1892_v43  ;;  %v1891_v8 = vadd.f32 %v1868_v0, %v1739_v60 }
 0x14d   : > { %v2596_v12 = vpop.f32.mrf.mxu1  ;;  %v2610_v10 = vpop.f32.mrf.mxu0 }
 0x14e   : > { %2062 = vst.msk [vmem:[%s3251_s29 + $0x10] sm:$0xff] %vm724_vm1, %v2054_v4  ;;  %v2057_v5 = vadd.f32 %v2400_v25, %v2042_v6  ;;  %v2041_v14 = vadd.f32 %v2018_v2, %v1891_v8  ;;  %v1894_v15 = vadd.f32 %v2596_v12, %v1742_v3 }
 0x14f   : > { %v1878_v16 = vpop.f32.mrf.mxu1  ;;  %v2028_v19 = vpop.f32.mrf.mxu0 }
 0x150   : > { %2065 = vst.msk [vmem:[%s3251_s29 + $0x28] sm:$0xff] %vm724_vm1, %v2057_v5  ;;  %v2056_v7 = vadd.f32 %v2400_v25, %v2041_v14  ;;  %v2044_v17 = vadd.f32 %v2610_v10, %v1894_v15  ;;  %v1893_v18 = vadd.f32 %v1878_v16, %v1741_v13 }
 0x152   : > { %2064 = vst.msk [vmem:[%s3251_s29 + $0x20] sm:$0xff] %vm724_vm1, %v2056_v7  ;;  %v2059_v20 = vadd.f32 %v2400_v25, %v2044_v17  ;;  %v2043_v21 = vadd.f32 %v2028_v19, %v1893_v18 }
 0x154   : > { %2067 = vst.msk [vmem:[%s3251_s29 + $0x38] sm:$0xff] %vm724_vm1, %v2059_v20  ;;  %v2058_v9 = vadd.f32 %v2400_v25, %v2043_v21 }
 0x156   : > { %2066 = vst.msk [vmem:[%s3251_s29 + $0x30] sm:$0xff] %vm724_vm1, %v2058_v9 }
 0x157 PF: > { %s14_s19 = sadd.s32 1, %s2740_s19   ;;  %s3291_s15 = smov %s2728_s16 }
 0x158   : > { %p11_p11 = scmp.ge.s32.totalorder %s14_s19, 4   ;;  %s3292_s16 = smov %s2810_s24 }
 0x159   : > { %s3293_s17 = smov %s2736_s18  ;;  %s3294_s18 = smov %s3296_s20 }
 0x15a   :  { %13 = sbr.rel (!%p11_p11) target bundleno = 3 (0x3), region = 213 }

</bundles_post_ra>
